<compile_context>
chip_gen: v7x
topology: tpu7x:2x2x1
jax: 0.10.0
libtpu: 0.0.40
codegen_flags: <defaults>
</compile_context>

<pallas_src>
import math

import jax
import jax.numpy as jnp
from jax.experimental import pallas as pl
from jax.experimental.pallas import tpu as pltpu


def _ffn_kernel(x_ref, w1_ref, b1_ref, w2_ref, b2_ref, o_ref, acc_ref):
    """One (row-tile i, hidden-tile j) step of the fused FFN."""
    j = pl.program_id(1)

    # Hidden tile: (tm, tf) = relu(x @ W1_block + b1_block) -- stays in VMEM.
    h = jnp.dot(x_ref[...], w1_ref[...], preferred_element_type=jnp.float32)
    h = jnp.maximum(h + b1_ref[...].astype(jnp.float32), 0.0)
    # TODO(synk): nn.Dropout is identity here (eval mode / p=0).
    h = h.astype(w2_ref.dtype)

    # Partial second matmul for this hidden block: (tm, d_model), f32.
    partial = jnp.dot(h, w2_ref[...], preferred_element_type=jnp.float32)

    @pl.when(j == 0)
    def _():
        acc_ref[...] = partial          # write directly; no zero-init pass

    @pl.when(j > 0)
    def _():
        acc_ref[...] += partial

    @pl.when(j == pl.num_programs(1) - 1)
    def _():
        out = acc_ref[...] + b2_ref[...].astype(jnp.float32)
        o_ref[...] = out.astype(o_ref.dtype)


def _pick_tile(dim, target, align):
    """Largest tile <= target that divides `dim` and is a multiple of `align`
    (falls back to the full dim, which always satisfies the layout rule)."""
    if dim <= target:
        return dim
    t = (target // align) * align
    while t >= align:
        if dim % t == 0:
            return t
        t -= align
    return dim


def _vmem_bytes(tm, tf, d_model, c_isize, o_isize):
    """Estimated live VMEM for one grid step (double-buffered I/O + scratch)."""
    in_bufs = 2 * (tm * d_model * c_isize        # x tile
                   + d_model * tf * c_isize      # W1 block
                   + tf * 4                      # b1 slice (f32)
                   + tf * d_model * c_isize      # W2 block
                   + d_model * 4)                # b2
    out_bufs = 2 * tm * d_model * o_isize        # output tile
    acc = tm * d_model * 4                       # f32 accumulator
    hidden = tm * tf * 4 + tm * tf * c_isize     # f32 h + cast copy
    return in_bufs + out_bufs + acc + hidden


def feed_forward_block(x, w1, b1, w2, b2, *, tm=None, tf=None,
                       compute_dtype=jnp.bfloat16,
                       vmem_budget_bytes=48 * 1024 * 1024):
    """x: (..., d_model); w1: (d_model, d_ff); b1: (d_ff,);
    w2: (d_ff, d_model); b2: (d_model,)."""
    orig_shape = x.shape
    d_model = orig_shape[-1]
    d_ff = w1.shape[1]
    M = math.prod(orig_shape[:-1])
    out_dtype = x.dtype

    if compute_dtype is None:
        compute_dtype = x.dtype
    c_isize = jnp.dtype(compute_dtype).itemsize
    o_isize = jnp.dtype(out_dtype).itemsize
    # bf16 vregs pack 16 sublanes -> align row tile to 16 (8 is enough for f32).
    row_align = 16 if c_isize < 4 else 8

    # Hidden tile: big blocks = fewer grid steps & fewer accumulator RMW passes.
    if tf is None:
        tf = 1024
    tf = _pick_tile(d_ff, tf, 128)

    # Row tile: as large as the VMEM budget allows (keeps the kernel MXU-bound
    # instead of weight-bandwidth-bound when M is large).
    if tm is None:
        tm_target = 1024
        while (tm_target > row_align and
               _vmem_bytes(tm_target, tf, d_model, c_isize, o_isize)
               > vmem_budget_bytes):
            tm_target //= 2
        tm = tm_target
    tm = _pick_tile(M, tm, row_align)
    grid = (M // tm, d_ff // tf)

    # Explicit VMEM limit derived from the chosen tiles (scoped defaults of
    # 16/32/32 MiB would otherwise cap tile size).
    needed = _vmem_bytes(tm, tf, d_model, c_isize, o_isize)
    vmem_limit = int(min(max(needed * 1.25 + (2 << 20), 32 << 20), 96 << 20))

    # Cast streamed operands in the wrapper: halves weight DMA bytes and uses
    # the native bf16 MXU path; biases stay f32 for the epilogue.
    x2 = x.reshape(M, d_model).astype(compute_dtype)
    w1c = w1.astype(compute_dtype)
    w2c = w2.astype(compute_dtype)
    b1f = b1.reshape(1, d_ff).astype(jnp.float32)
    b2f = b2.reshape(1, d_model).astype(jnp.float32)

    out = pl.pallas_call(
        _ffn_kernel,
        grid=grid,
        in_specs=[
            pl.BlockSpec((tm, d_model), lambda i, j: (i, 0)),   # x rows
            pl.BlockSpec((d_model, tf), lambda i, j: (0, j)),   # W1 cols
            pl.BlockSpec((1, tf),       lambda i, j: (0, j)),   # b1 slice
            pl.BlockSpec((tf, d_model), lambda i, j: (j, 0)),   # W2 rows
            pl.BlockSpec((1, d_model),  lambda i, j: (0, 0)),   # b2
        ],
        out_specs=pl.BlockSpec((tm, d_model), lambda i, j: (i, 0)),
        out_shape=jax.ShapeDtypeStruct((M, d_model), out_dtype),
        scratch_shapes=[pltpu.VMEM((tm, d_model), jnp.float32)],
        compiler_params=pltpu.CompilerParams(
            dimension_semantics=("parallel", "arbitrary"),
            vmem_limit_bytes=vmem_limit),
    )(x2, w1c, b1f, w2c, b2f)
    return out.reshape(orig_shape)


def _reference(x, w1, b1, w2, b2):
    h = jnp.maximum(jnp.dot(x, w1) + b1, 0.0)
    return jnp.dot(h, w2) + b2


if __name__ == "__main__":
    key = jax.random.PRNGKey(0)

    # --- small case consistent with the module: batch=2, seq=8, d_model=32 ---
    B, S, D, DFF = 2, 8, 32, 64
    k1, k2, k3, k4 = jax.random.split(key, 4)
    x = jax.random.normal(k1, (B, S, D), dtype=jnp.float32)
    w1 = 0.05 * jax.random.normal(k2, (D, DFF), dtype=jnp.float32)
    b1 = 0.01 * jax.random.normal(k3, (DFF,), dtype=jnp.float32)
    w2 = 0.05 * jax.random.normal(k4, (DFF, D), dtype=jnp.float32)
    b2 = jnp.zeros((D,), dtype=jnp.float32)

    ref = _reference(x, w1, b1, w2, b2)

    # exact (f32-compute) path
    out_f32 = feed_forward_block(x, w1, b1, w2, b2, compute_dtype=jnp.float32)
    jax.block_until_ready(out_f32)
    assert out_f32.shape == (B, S, D)
    assert jnp.allclose(out_f32, ref, rtol=1e-5, atol=1e-5), "f32 mismatch"

    # default bf16-operand / f32-accumulate path
    out_bf = feed_forward_block(x, w1, b1, w2, b2)
    jax.block_until_ready(out_bf)
    assert jnp.allclose(out_bf, ref, rtol=2e-2, atol=2e-2), "bf16 mismatch"

    # --- larger case exercising the tiled grid / accumulator path ---
    B2, S2, D2, DFF2 = 4, 128, 256, 1024
    k5, k6, k7 = jax.random.split(k1, 3)
    x_l = jax.random.normal(k5, (B2, S2, D2), dtype=jnp.float32)
    w1_l = 0.02 * jax.random.normal(k6, (D2, DFF2), dtype=jnp.float32)
    b1_l = jnp.zeros((DFF2,), dtype=jnp.float32)
    w2_l = 0.02 * jax.random.normal(k7, (DFF2, D2), dtype=jnp.float32)
    b2_l = jnp.zeros((D2,), dtype=jnp.float32)
    ref_l = _reference(x_l.reshape(-1, D2), w1_l, b1_l, w2_l, b2_l)

    out_lf = feed_forward_block(x_l, w1_l, b1_l, w2_l, b2_l,
                                compute_dtype=jnp.float32, tm=256, tf=512)
    jax.block_until_ready(out_lf)
    assert jnp.allclose(out_lf.reshape(-1, D2), ref_l, rtol=1e-4, atol=1e-4), \
        "tiled f32 mismatch"

    out_lb = feed_forward_block(x_l, w1_l, b1_l, w2_l, b2_l)   # bf16 default
    jax.block_until_ready(out_lb)
    assert jnp.allclose(out_lb.reshape(-1, D2), ref_l, rtol=3e-2, atol=3e-2), \
        "tiled bf16 mismatch"

    print("KERNEL_OK")
</pallas_src>

<mosaic_0001>
module attributes {stable_mosaic.version = 11 : i64} {
  func.func @_ffn_kernel(%arg0: i32, %arg1: i32, %arg2: memref<16x32xf32, #tpu.memory_space<vmem>>, %arg3: memref<32x64xf32, #tpu.memory_space<vmem>>, %arg4: memref<1x64xf32, #tpu.memory_space<vmem>>, %arg5: memref<64x32xf32, #tpu.memory_space<vmem>>, %arg6: memref<1x32xf32, #tpu.memory_space<vmem>>, %arg7: memref<16x32xf32, #tpu.memory_space<vmem>>, %arg8: memref<16x32xf32, #tpu.memory_space<vmem>>) attributes {dimension_semantics = [#tpu.dimension_semantics<parallel>, #tpu.dimension_semantics<arbitrary>], iteration_bounds = array<i64: 1, 1>, scalar_prefetch = 0 : i64, scratch_operands = 1 : i64, tpu.core_type = #tpu.core_type<tc>, window_params = [{transform_indices = @transform_0, window_bounds = array<i64: 16, 32>}, {transform_indices = @transform_1, window_bounds = array<i64: 32, 64>}, {transform_indices = @transform_2, window_bounds = array<i64: 1, 64>}, {transform_indices = @transform_3, window_bounds = array<i64: 64, 32>}, {pipeline_mode = #tpu.pipeline_mode<synchronous>, transform_indices = @transform_4, window_bounds = array<i64: 1, 32>}, {transform_indices = @transform_5, window_bounds = array<i64: 16, 32>}]} {
    %c0 = arith.constant 0 : index
    %c0_0 = arith.constant 0 : index
    %0 = vector.load %arg2[%c0, %c0_0] : memref<16x32xf32, #tpu.memory_space<vmem>>, vector<16x32xf32>
    %c0_1 = arith.constant 0 : index
    %c0_2 = arith.constant 0 : index
    %1 = vector.load %arg3[%c0_1, %c0_2] : memref<32x64xf32, #tpu.memory_space<vmem>>, vector<32x64xf32>
    %cst = arith.constant dense<0.000000e+00> : vector<16x64xf32>
    %2 = tpu.matmul %0, %1, %cst {dimension_numbers = #tpu.dot_dimension_numbers<[1], [0], [0], [1], [0, 0, 1, 1], [], []>} : vector<16x32xf32>, vector<32x64xf32>, vector<16x64xf32> -> vector<16x64xf32>
    %c0_3 = arith.constant 0 : index
    %c0_4 = arith.constant 0 : index
    %3 = vector.load %arg4[%c0_3, %c0_4] : memref<1x64xf32, #tpu.memory_space<vmem>>, vector<1x64xf32>
    %4 = vector.broadcast %3 : vector<1x64xf32> to vector<16x64xf32>
    %5 = arith.addf %2, %4 : vector<16x64xf32>
    %cst_5 = arith.constant 0.000000e+00 : f32
    %6 = vector.broadcast %cst_5 : f32 to vector<16x64xf32>
    %7 = arith.maximumf %5, %6 : vector<16x64xf32>
    %c0_6 = arith.constant 0 : index
    %c0_7 = arith.constant 0 : index
    %8 = vector.load %arg5[%c0_6, %c0_7] : memref<64x32xf32, #tpu.memory_space<vmem>>, vector<64x32xf32>
    %cst_8 = arith.constant dense<0.000000e+00> : vector<16x32xf32>
    %9 = tpu.matmul %7, %8, %cst_8 {dimension_numbers = #tpu.dot_dimension_numbers<[1], [0], [0], [1], [0, 0, 1, 1], [], []>} : vector<16x64xf32>, vector<64x32xf32>, vector<16x32xf32> -> vector<16x32xf32>
    %c0_i32 = arith.constant 0 : i32
    %10 = arith.cmpi eq, %arg1, %c0_i32 : i32
    %11 = arith.extui %10 : i1 to i32
    %c0_i32_9 = arith.constant 0 : i32
    %12 = arith.cmpi ne, %11, %c0_i32_9 : i32
    scf.if %12 {
      %c0_14 = arith.constant 0 : index
      %c0_15 = arith.constant 0 : index
      %19 = vector.load %arg8[%c0_14, %c0_15] : memref<16x32xf32, #tpu.memory_space<vmem>>, vector<16x32xf32>
      tpu.vector_store %arg8[%c0_14, %c0_15], %9 {strides = array<i32>} : memref<16x32xf32, #tpu.memory_space<vmem>>, vector<16x32xf32>,
    } else {
    }
    %c0_i32_10 = arith.constant 0 : i32
    %13 = arith.cmpi sgt, %arg1, %c0_i32_10 : i32
    %14 = arith.extui %13 : i1 to i32
    %c0_i32_11 = arith.constant 0 : i32
    %15 = arith.cmpi ne, %14, %c0_i32_11 : i32
    scf.if %15 {
      %c0_14 = arith.constant 0 : index
      %c0_15 = arith.constant 0 : index
      %19 = vector.load %arg8[%c0_14, %c0_15] : memref<16x32xf32, #tpu.memory_space<vmem>>, vector<16x32xf32>
      %20 = arith.addf %19, %9 : vector<16x32xf32>
      %c0_16 = arith.constant 0 : index
      %c0_17 = arith.constant 0 : index
      %21 = vector.load %arg8[%c0_16, %c0_17] : memref<16x32xf32, #tpu.memory_space<vmem>>, vector<16x32xf32>
      tpu.vector_store %arg8[%c0_16, %c0_17], %20 {strides = array<i32>} : memref<16x32xf32, #tpu.memory_space<vmem>>, vector<16x32xf32>,
    } else {
    }
    %c0_i32_12 = arith.constant 0 : i32
    %16 = arith.cmpi eq, %arg1, %c0_i32_12 : i32
    %17 = arith.extui %16 : i1 to i32
    %c0_i32_13 = arith.constant 0 : i32
    %18 = arith.cmpi ne, %17, %c0_i32_13 : i32
    scf.if %18 {
      %c0_14 = arith.constant 0 : index
      %c0_15 = arith.constant 0 : index
      %19 = vector.load %arg8[%c0_14, %c0_15] : memref<16x32xf32, #tpu.memory_space<vmem>>, vector<16x32xf32>
      %c0_16 = arith.constant 0 : index
      %c0_17 = arith.constant 0 : index
      %20 = vector.load %arg6[%c0_16, %c0_17] : memref<1x32xf32, #tpu.memory_space<vmem>>, vector<1x32xf32>
      %21 = vector.broadcast %20 : vector<1x32xf32> to vector<16x32xf32>
      %22 = arith.addf %19, %21 : vector<16x32xf32>
      %c0_18 = arith.constant 0 : index
      %c0_19 = arith.constant 0 : index
      %23 = vector.load %arg7[%c0_18, %c0_19] : memref<16x32xf32, #tpu.memory_space<vmem>>, vector<16x32xf32>
      tpu.vector_store %arg7[%c0_18, %c0_19], %22 {strides = array<i32>} : memref<16x32xf32, #tpu.memory_space<vmem>>, vector<16x32xf32>,
    } else {
    }
    return
  }
  func.func @transform_0(%arg0: i32, %arg1: i32) -> (i32, i32) {
    %c0_i32 = arith.constant 0 : i32
    %c0_i32_0 = arith.constant 0 : i32
    return %arg0, %c0_i32 : i32, i32
  }
  func.func @transform_1(%arg0: i32, %arg1: i32) -> (i32, i32) {
    %c0_i32 = arith.constant 0 : i32
    %c0_i32_0 = arith.constant 0 : i32
    return %c0_i32, %arg1 : i32, i32
  }
  func.func @transform_2(%arg0: i32, %arg1: i32) -> (i32, i32) {
    %c0_i32 = arith.constant 0 : i32
    %c0_i32_0 = arith.constant 0 : i32
    return %c0_i32, %arg1 : i32, i32
  }
  func.func @transform_3(%arg0: i32, %arg1: i32) -> (i32, i32) {
    %c0_i32 = arith.constant 0 : i32
    %c0_i32_0 = arith.constant 0 : i32
    return %arg1, %c0_i32 : i32, i32
  }
  func.func @transform_4(%arg0: i32, %arg1: i32) -> (i32, i32) {
    %c0_i32 = arith.constant 0 : i32
    %c0_i32_0 = arith.constant 0 : i32
    %c0_i32_1 = arith.constant 0 : i32
    return %c0_i32, %c0_i32_0 : i32, i32
  }
  func.func @transform_5(%arg0: i32, %arg1: i32) -> (i32, i32) {
    %c0_i32 = arith.constant 0 : i32
    %c0_i32_0 = arith.constant 0 : i32
    return %arg0, %c0_i32 : i32, i32
  }
}

</mosaic_0001>

<bundles_post_ra>
// kernel: tpu_custom_call.1
= control target key start
LH: loop header
LB: loop body
LE: loop exit
PB: predicated region body
PF: predicated region fallthrough
CT: control target
= control target key end

     0   :  { %vm34_vm0 = vcmask 261120   ;;  %s458_s0 = inlined_call_operand.vmem [shape: f32[16,32], index: 0, kind: input, shape index: {}]   ;;  %s459_s1 = inlined_call_operand.vmem [shape: f32[32,64], index: 1, kind: input, shape index: {}]   ;;  %s460_s2 = inlined_call_operand.vmem [shape: f32[1,64], index: 2, kind: input, shape index: {}]   ;;  %s461_s3 = inlined_call_operand.vmem [shape: f32[64,32], index: 3, kind: input, shape index: {}]   ;;  %s462_s4 = inlined_call_operand.vmem [shape: f32[1,32], index: 4, kind: input, shape index: {}]   ;;  %s463_s5 = inlined_call_operand.hbm [shape: f32[16,32], index: 5, kind: output, shape index: {}]  }
   0x1   :  { %v23_v0 = vld [vmem:[%s459_s1] sm:$0xff]  ;;  %v24_v1 = vld [vmem:[%s459_s1 + $0x8] sm:$0xff]  ;;  %v25_v2 = vld [vmem:[%s459_s1 + $0x10] sm:$0xff] }
   0x2   :  { %v308_v3 = vpack.c.bf16 %v24_v1, %v23_v0  ;;  %v26_v4 = vld [vmem:[%s459_s1 + $0x18] sm:$0xff]  ;;  %v21_v5 = vld [vmem:[%s458_s0] sm:$0xff]  ;;  %v119_v8 = vld [vmem:[%s461_s3 + $0x8] sm:$0xff] }
   0x3   :  { %v312_v6 = vpack.c.bf16 %v26_v4, %v25_v2  ;;  %286 = vmatprep.mubr.msk.f32.mxu0 %vm34_vm0, %v21_v5  ;;  %v118_v7 = vld [vmem:[%s461_s3] sm:$0xff]  ;;  %v120_v9 = vld [vmem:[%s461_s3 + $0x10] sm:$0xff]  ;;  %v121_v11 = vld [vmem:[%s461_s3 + $0x18] sm:$0xff] }
   0x4   :  { %309 = vmatprep.subr.bf16.mxu0 %v308_v3  ;;  %v316_v10 = vpack.c.bf16 %v119_v8, %v118_v7  ;;  %v320_v12 = vpack.c.bf16 %v121_v11, %v120_v9  ;;  %v122_v13 = vld [vmem:[%s461_s3 + $0x20] sm:$0xff]  ;;  %v123_v14 = vld [vmem:[%s461_s3 + $0x28] sm:$0xff] }
   0x5   :  { %311 = vmatpush3.bf16.msra.mxu0 %v308_v3 }
   0x6   :  { %10 = vsyncpa [#allocation4], 0  ;;  %313 = vmatprep.subr.bf16.mxu0 %v312_v6  ;;  %317 = vmatprep.subr.bf16.mxu1 %v316_v10  ;;  %v324_v15 = vpack.c.bf16 %v123_v14, %v122_v13  ;;  %v22_v16 = vld [vmem:[%s458_s0 + $0x8] sm:$0xff]  ;;  %v124_v17 = vld [vmem:[%s461_s3 + $0x30] sm:$0xff]  ;;  %vm126_vm1 = vcmask 523264  }
   0x7   :  { %319 = vmatpush3.bf16.msra.mxu1 %v316_v10  ;;  %v125_v18 = vld [vmem:[%s461_s3 + $0x38] sm:$0xff]  ;;  %v256_v20 = vld [vmem:[%s460_s2] ss:$0 sm:$0xff]  ;;  %s359_s2 = smov [#allocation3]  }
   0x8   :  { %321 = vmatprep.subr.bf16.mxu1 %v320_v12  ;;  %v328_v19 = vpack.c.bf16 %v125_v18, %v124_v17  ;;  %v261_v29 = vld [vmem:[%s462_s4] ss:$0 sm:$0xff]  ;;  %s245_s22 = sshll.u32 %s359_s2, 4  ;;  %s246_s22 = int_to_ptr.vmem [resolvable:$true] %s245_s22 }
   0x9   :  { %315 = vmatpush3.bf16.msra.mxu0 %v312_v6  ;;  %s335_s23 = scalar_lea.vmem %s246_s22, 256  ;;  %p340_p1 = scmp.lt.s32.totalorder %s246_s22, %s246_s22 }
   0xa   :  { %p336_p0 = scmp.ne.s32.totalorder %s246_s22, %s335_s23  ;;  %p341_p2 = scmp.lt.s32.totalorder %s335_s23, %s335_s23 }
   0xb   :  { %323 = vmatpush3.bf16.msra.mxu1 %v320_v12 }
   0xc   :  { %287 = vmatmul.mubr.msk.f32.vlgmr.msra.gmra.mrb[0].mxu0 %vm34_vm0, %v22_v16  ;;  %325 = vmatprep.subr.bf16.mxu1 %v324_v15  ;;  %p342_p3 = por %p341_p2, %p340_p1 }
   0xe   :  { %p343_p4 = pnand %p342_p3, %p336_p0 }
   0xf   :  { %327 = vmatpush3.bf16.msra.mxu1 %v324_v15 }
  0x10   :  { %329 = vmatprep.subr.bf16.mxu1 %v328_v19 }
  0x13   :  { %331 = vmatpush3.bf16.msra.mxu1 %v328_v19 }
  0xdf   :  { %v288_v21 = vpop.f32.mrb[0].mxu0 }
  0xe0   :  { %v113_v22 = vadd.f32 %v288_v21, %v256_v20  ;;  %v107_v23 = vpop.f32.mrb[1].mxu0 }
  0xe1   :  { %v108_v24 = vadd.f32 %v256_v20, %v107_v23 }
  0xe2   :  { %v117_v26 = vmax.f32 %v113_v22, 0.0 }
  0xe3   :  { %v116_v25 = vmax.f32 %v108_v24, 0.0 }
  0xe5   :  { %305 = vmatprep.mubr.msk.f32.mxu1 %vm126_vm1, %v116_v25 }
  0xe6   :  { %306 = vmatmul.mubr.msk.f32.vlgmr.msra.gmra.mrb[0].mxu1 %vm126_vm1, %v117_v26 }
 0x1b9   :  { %v307_v27 = vpop.f32.mrb[0].mxu1 }
 0x1ba   :  { %213 = vst.msk [vmem:[#allocation2 + $0x8] sm:$0xff] %vm34_vm0, %v307_v27  ;;  %v199_v28 = vpop.f32.mrb[1].mxu1 }
 0x1bb   :  { %212 = vst.msk [vmem:[#allocation2] sm:$0xff] %vm34_vm0, %v199_v28 }
 0x1c1   :  { %v228_v30 = vld [vmem:[#allocation2 + $0x8] sm:$0xff] }
 0x1c2   :  { %v227_v31 = vld [vmem:[#allocation2] sm:$0xff]  ;;  %v237_v32 = vadd.f32 %v261_v29, %v228_v30 }
 0x1c3   :  { %v236_v33 = vadd.f32 %v261_v29, %v227_v31 }
 0x1c4   :  { %239 = vst.msk [vmem:[#allocation3 + $0x8] sm:$0xff] %vm34_vm0, %v237_v32 }
 0x1c5   :  { %238 = vst.msk [vmem:[#allocation3] sm:$0xff] %vm34_vm0, %v236_v33 }
 0x1c6   :  { %346 = shalt.err (!%p343_p4)
}
 0x1c7   :  { %s347_s25 = scalar_lea.hbm %s463_s5, 256 }
 0x1c8   :  { %p348_p5 = scmp.ne.s32.totalorder %s463_s5, %s347_s25  ;;  %p351_p6 = scmp.lt.u32.totalorder %s347_s25, %s463_s5 }
 0x1ca   :  { %p353_p7 = pnand %p351_p6, %p348_p5 }
 0x1cc   :  { %356 = shalt.err (!%p353_p7)
}
 0x1cd   :  { %s360_s30 = smov 128   ;;  %s361_s6 = smov 8  }
 0x1ce   :  { %251 = dma.vmem_to_hbm [thread:$0]  %s246_s22, 256, %s463_s5, [#allocation4], %s360_s30, %s360_s30, %s361_s6  }
 0x1cf   :  { %357 = dma.done.wait [#allocation4], 256  }
 0x1d0   :  { %358 = vsyncadd [#allocation4], 4294967040 }
 0x1d1   :  { %255 = vsyncpa [#allocation4], 1 }

</bundles_post_ra>
